<compile_context>
chip_gen: v7x
topology: tpu7x:2x2x1
jax: 0.10.0
libtpu: 0.0.40
codegen_flags: <defaults>
</compile_context>

<pallas_src>
import jax
import jax.numpy as jnp
from jax.experimental import pallas as pl
from jax.experimental.pallas import tpu as pltpu

LANES = 128
SUBLANES = 8
MAX_TILE_ROWS = 2048  # 2048 x 128 f32 = 1 MiB per input block


def _scaled_mse_kernel(x_ref, y_ref, sq_ref, abs_ref):
    k = pl.program_id(1)

    @pl.when(k == 0)
    def _():
        sq_ref[...] = jnp.zeros_like(sq_ref)
        abs_ref[...] = jnp.zeros_like(abs_ref)

    d = x_ref[...].astype(jnp.float32) - y_ref[...].astype(jnp.float32)
    # Layout-preserving regroup: last two dims stay (8, 128) vreg tiles.
    d3 = d.reshape(-1, SUBLANES, LANES)
    # Reduce only across vregs (leading axis): pure VPU adds every step; the
    # expensive cross-lane/sublane reduction is paid exactly once, outside.
    sq_ref[...] += jnp.sum(d3 * d3, axis=0, keepdims=True)
    abs_ref[...] += jnp.sum(jnp.abs(d3), axis=0, keepdims=True)


def _round_up(a, b):
    return pl.cdiv(a, b) * b


def scaled_mse_loss(x, y, eps=1e-8):
    assert x.shape == y.shape, "input/target shape mismatch"
    n = x.size

    rows_needed = pl.cdiv(n, LANES)
    tile_rows = min(MAX_TILE_ROWS, _round_up(rows_needed, SUBLANES))
    blocks_needed = pl.cdiv(rows_needed, tile_rows)
    # Split across the two TensorCores when there is more than one block
    # (v7x megacore); a plain serial loop on single-TC chips.
    num_cores = 2 if blocks_needed >= 2 else 1
    k_blocks = pl.cdiv(blocks_needed, num_cores)
    total_rows = num_cores * k_blocks * tile_rows
    padded_n = total_rows * LANES

    xf = x.reshape(-1)
    yf = y.reshape(-1)
    if padded_n != n:
        # Zero padding is exact: adds 0 to both sum(diff^2) and sum(|diff|).
        xf = jnp.pad(xf, (0, padded_n - n))
        yf = jnp.pad(yf, (0, padded_n - n))
    x2 = xf.reshape(total_rows, LANES)
    y2 = yf.reshape(total_rows, LANES)

    in_map = lambda p, k: (p * k_blocks + k, 0)
    out_map = lambda p, k: (p, 0, 0)

    sq_part, abs_part = pl.pallas_call(
        _scaled_mse_kernel,
        out_shape=(
            jax.ShapeDtypeStruct((num_cores, SUBLANES, LANES), jnp.float32),
            jax.ShapeDtypeStruct((num_cores, SUBLANES, LANES), jnp.float32),
        ),
        grid_spec=pltpu.PrefetchScalarGridSpec(
            num_scalar_prefetch=0,
            grid=(num_cores, k_blocks),
            in_specs=[
                pl.BlockSpec((tile_rows, LANES), in_map),
                pl.BlockSpec((tile_rows, LANES), in_map),
            ],
            out_specs=[
                pl.BlockSpec((1, SUBLANES, LANES), out_map),
                pl.BlockSpec((1, SUBLANES, LANES), out_map),
            ],
        ),
        compiler_params=pltpu.CompilerParams(
            dimension_semantics=("parallel", "arbitrary"),
        ),
    )(x2, y2)

    # Tiny epilogue in plain JAX: final reduce of (num_cores, 8, 128) partials.
    return jnp.sum(sq_part) / (jnp.sum(abs_part) + jnp.float32(eps))


if __name__ == "__main__":
    key = jax.random.PRNGKey(0)
    k1, k2 = jax.random.split(key)
    # NCHW-shaped example inputs (loss just reduces over all elements).
    x = jax.random.normal(k1, (2, 4, 16, 16), dtype=jnp.float32)
    t = jax.random.normal(k2, (2, 4, 16, 16), dtype=jnp.float32)

    loss = scaled_mse_loss(x, t)
    jax.block_until_ready(loss)

    # Pure-JAX reference check.
    diff = x - t
    ref = jnp.sum(diff * diff) / (jnp.sum(jnp.abs(diff)) + 1e-8)
    assert jnp.allclose(loss, ref, rtol=1e-5, atol=1e-6), (loss, ref)

    print("KERNEL_OK")
</pallas_src>

<mosaic_0001>
module attributes {stable_mosaic.version = 11 : i64} {
  func.func @_scaled_mse_kernel(%arg0: i32, %arg1: i32, %arg2: memref<16x128xf32, #tpu.memory_space<vmem>>, %arg3: memref<16x128xf32, #tpu.memory_space<vmem>>, %arg4: memref<1x8x128xf32, #tpu.memory_space<vmem>>, %arg5: memref<1x8x128xf32, #tpu.memory_space<vmem>>) attributes {dimension_semantics = [#tpu.dimension_semantics<parallel>, #tpu.dimension_semantics<arbitrary>], iteration_bounds = array<i64: 1, 1>, scalar_prefetch = 0 : i64, scratch_operands = 0 : i64, tpu.core_type = #tpu.core_type<tc>, window_params = [{transform_indices = @transform_0, window_bounds = array<i64: 16, 128>}, {transform_indices = @transform_1, window_bounds = array<i64: 16, 128>}, {transform_indices = @transform_2, window_bounds = array<i64: 1, 8, 128>}, {transform_indices = @transform_3, window_bounds = array<i64: 1, 8, 128>}]} {
    %c0_i32 = arith.constant 0 : i32
    %0 = arith.cmpi eq, %arg1, %c0_i32 : i32
    %1 = arith.extui %0 : i1 to i32
    %c0_i32_0 = arith.constant 0 : i32
    %2 = arith.cmpi ne, %1, %c0_i32_0 : i32
    scf.if %2 {
      %cst_17 = arith.constant 0.000000e+00 : f32
      %19 = vector.broadcast %cst_17 : f32 to vector<1x8x128xf32>
      %c0_18 = arith.constant 0 : index
      %c0_19 = arith.constant 0 : index
      %c0_20 = arith.constant 0 : index
      %20 = vector.load %arg4[%c0_18, %c0_19, %c0_20] : memref<1x8x128xf32, #tpu.memory_space<vmem>>, vector<1x8x128xf32>
      tpu.vector_store %arg4[%c0_18, %c0_19, %c0_20], %19 {strides = array<i32>} : memref<1x8x128xf32, #tpu.memory_space<vmem>>, vector<1x8x128xf32>,
      %cst_21 = arith.constant 0.000000e+00 : f32
      %21 = vector.broadcast %cst_21 : f32 to vector<1x8x128xf32>
      %c0_22 = arith.constant 0 : index
      %c0_23 = arith.constant 0 : index
      %c0_24 = arith.constant 0 : index
      %22 = vector.load %arg5[%c0_22, %c0_23, %c0_24] : memref<1x8x128xf32, #tpu.memory_space<vmem>>, vector<1x8x128xf32>
      tpu.vector_store %arg5[%c0_22, %c0_23, %c0_24], %21 {strides = array<i32>} : memref<1x8x128xf32, #tpu.memory_space<vmem>>, vector<1x8x128xf32>,
    } else {
    }
    %c0 = arith.constant 0 : index
    %c0_1 = arith.constant 0 : index
    %3 = vector.load %arg2[%c0, %c0_1] : memref<16x128xf32, #tpu.memory_space<vmem>>, vector<16x128xf32>
    %c0_2 = arith.constant 0 : index
    %c0_3 = arith.constant 0 : index
    %4 = vector.load %arg3[%c0_2, %c0_3] : memref<16x128xf32, #tpu.memory_space<vmem>>, vector<16x128xf32>
    %5 = arith.subf %3, %4 : vector<16x128xf32>
    %6 = vector.shape_cast %5 : vector<16x128xf32> to vector<2x8x128xf32>
    %c0_4 = arith.constant 0 : index
    %c0_5 = arith.constant 0 : index
    %c0_6 = arith.constant 0 : index
    %7 = vector.load %arg4[%c0_4, %c0_5, %c0_6] : memref<1x8x128xf32, #tpu.memory_space<vmem>>, vector<1x8x128xf32>
    %8 = arith.mulf %6, %6 : vector<2x8x128xf32>
    %cst = arith.constant dense<0.000000e+00> : vector<8x128xf32>
    %9 = vector.multi_reduction <add>, %8, %cst [0] : vector<2x8x128xf32> to vector<8x128xf32>
    %10 = vector.shape_cast %9 : vector<8x128xf32> to vector<1x8x128xf32>
    %11 = arith.addf %7, %10 : vector<1x8x128xf32>
    %c0_7 = arith.constant 0 : index
    %c0_8 = arith.constant 0 : index
    %c0_9 = arith.constant 0 : index
    %12 = vector.load %arg4[%c0_7, %c0_8, %c0_9] : memref<1x8x128xf32, #tpu.memory_space<vmem>>, vector<1x8x128xf32>
    tpu.vector_store %arg4[%c0_7, %c0_8, %c0_9], %11 {strides = array<i32>} : memref<1x8x128xf32, #tpu.memory_space<vmem>>, vector<1x8x128xf32>,
    %c0_10 = arith.constant 0 : index
    %c0_11 = arith.constant 0 : index
    %c0_12 = arith.constant 0 : index
    %13 = vector.load %arg5[%c0_10, %c0_11, %c0_12] : memref<1x8x128xf32, #tpu.memory_space<vmem>>, vector<1x8x128xf32>
    %14 = math.absf %6 : vector<2x8x128xf32>
    %cst_13 = arith.constant dense<0.000000e+00> : vector<8x128xf32>
    %15 = vector.multi_reduction <add>, %14, %cst_13 [0] : vector<2x8x128xf32> to vector<8x128xf32>
    %16 = vector.shape_cast %15 : vector<8x128xf32> to vector<1x8x128xf32>
    %17 = arith.addf %13, %16 : vector<1x8x128xf32>
    %c0_14 = arith.constant 0 : index
    %c0_15 = arith.constant 0 : index
    %c0_16 = arith.constant 0 : index
    %18 = vector.load %arg5[%c0_14, %c0_15, %c0_16] : memref<1x8x128xf32, #tpu.memory_space<vmem>>, vector<1x8x128xf32>
    tpu.vector_store %arg5[%c0_14, %c0_15, %c0_16], %17 {strides = array<i32>} : memref<1x8x128xf32, #tpu.memory_space<vmem>>, vector<1x8x128xf32>,
    return
  }
  func.func @transform_0(%arg0: i32, %arg1: i32) -> (i32, i32) {
    %c1_i32 = arith.constant 1 : i32
    %0 = arith.muli %arg0, %c1_i32 : i32
    %1 = arith.addi %0, %arg1 : i32
    %c0_i32 = arith.constant 0 : i32
    %c0_i32_0 = arith.constant 0 : i32
    return %1, %c0_i32 : i32, i32
  }
  func.func @transform_1(%arg0: i32, %arg1: i32) -> (i32, i32) {
    %c1_i32 = arith.constant 1 : i32
    %0 = arith.muli %arg0, %c1_i32 : i32
    %1 = arith.addi %0, %arg1 : i32
    %c0_i32 = arith.constant 0 : i32
    %c0_i32_0 = arith.constant 0 : i32
    return %1, %c0_i32 : i32, i32
  }
  func.func @transform_2(%arg0: i32, %arg1: i32) -> (i32, i32, i32) {
    %c0_i32 = arith.constant 0 : i32
    %c0_i32_0 = arith.constant 0 : i32
    %c0_i32_1 = arith.constant 0 : i32
    return %arg0, %c0_i32, %c0_i32_0 : i32, i32, i32
  }
  func.func @transform_3(%arg0: i32, %arg1: i32) -> (i32, i32, i32) {
    %c0_i32 = arith.constant 0 : i32
    %c0_i32_0 = arith.constant 0 : i32
    %c0_i32_1 = arith.constant 0 : i32
    return %arg0, %c0_i32, %c0_i32_0 : i32, i32, i32
  }
}

</mosaic_0001>

<bundles_post_ra>
// kernel: tpu_custom_call.1
= control target key start
LH: loop header
LB: loop body
LE: loop exit
PB: predicated region body
PF: predicated region fallthrough
CT: control target
= control target key end

     0   :  { %9 = vsyncpa [#allocation3], 0  ;;  %s286_s0 = inlined_call_operand.hbm [shape: f32[16,128], index: 0, kind: input, shape index: {}]   ;;  %s287_s1 = inlined_call_operand.hbm [shape: f32[16,128], index: 1, kind: input, shape index: {}]   ;;  %s288_s2 = inlined_call_operand.hbm [shape: f32[1,8,128], index: 2, kind: output, shape index: {0}]   ;;  %s289_s3 = inlined_call_operand.hbm [shape: f32[1,8,128], index: 3, kind: output, shape index: {1}]  }
   0x1   :  { %10 = vsyncpa [#allocation6], 0 }
   0x2   :  { %11 = vsyncpa [#allocation4], 0 }
   0x3   :  { %12 = vsyncpa [#allocation9], 0  ;;  %s212_s12 = smov [#allocation2]   ;;  %s116_s16 = scalar_lea.hbm %s286_s0, 256 }
   0x4   :  { %s22_s13 = sshll.u32 %s212_s12, 4  ;;  %p117_p0 = scmp.ne.s32.totalorder %s286_s0, %s116_s16  ;;  %s23_s13 = int_to_ptr.vmem [resolvable:$true] %s22_s13 }
   0x5   :  { %p120_p1 = scmp.lt.u32.totalorder %s116_s16, %s286_s0 }
   0x7   :  { %p122_p2 = pnand %p120_p1, %p117_p0 }
   0x9   :  { %125 = shalt.err (!%p122_p2)
}
   0xa   :  { %s126_s21 = scalar_lea.vmem %s23_s13, 256  ;;  %p131_p4 = scmp.lt.s32.totalorder %s23_s13, %s23_s13 }
   0xb   :  { %p127_p3 = scmp.ne.s32.totalorder %s23_s13, %s126_s21  ;;  %p132_p5 = scmp.lt.s32.totalorder %s126_s21, %s126_s21 }
   0xd   :  { %p133_p6 = por %p132_p5, %p131_p4 }
   0xf   :  { %p134_p7 = pnand %p133_p6, %p127_p3 }
  0x11   :  { %137 = shalt.err (!%p134_p7)
}
  0x12   :  { %s213_s22 = smov 128   ;;  %s214_s23 = smov 8  }
  0x13   :  { %28 = dma.hbm_to_vmem [thread:$0]  %s286_s0, 256, %s23_s13, [#allocation3], %s213_s22, %s213_s22, %s214_s23  }
  0x14   :  { %s215_s26 = smov [#allocation5]   ;;  %s138_s30 = scalar_lea.hbm %s287_s1, 256 }
  0x15   :  { %s38_s27 = sshll.u32 %s215_s26, 4  ;;  %p139_p8 = scmp.ne.s32.totalorder %s287_s1, %s138_s30  ;;  %s39_s27 = int_to_ptr.vmem [resolvable:$true] %s38_s27 }
  0x16   :  { %p142_p9 = scmp.lt.u32.totalorder %s138_s30, %s287_s1 }
  0x18   :  { %p144_p10 = pnand %p142_p9, %p139_p8 }
  0x1a   :  { %147 = shalt.err (!%p144_p10)
}
  0x1b   :  { %s148_s8 = scalar_lea.vmem %s39_s27, 256  ;;  %p153_p12 = scmp.lt.s32.totalorder %s39_s27, %s39_s27 }
  0x1c   :  { %p149_p11 = scmp.ne.s32.totalorder %s39_s27, %s148_s8  ;;  %p154_p13 = scmp.lt.s32.totalorder %s148_s8, %s148_s8 }
  0x1e   :  { %p155_p0 = por %p154_p13, %p153_p12 }
  0x20   :  { %p156_p1 = pnand %p155_p0, %p149_p11 }
  0x22   :  { %159 = shalt.err (!%p156_p1)
}
  0x23   :  { %44 = dma.hbm_to_vmem [thread:$0]  %s287_s1, 256, %s39_s27, [#allocation6], %s213_s22, %s213_s22, %s214_s23  }
  0x24   :  { %204 = dma.done.wait [#allocation3], 256  }
  0x25   :  { %205 = vsyncadd [#allocation3], 4294967040 }
  0x26   :  { %206 = dma.done.wait [#allocation6], 256  }
  0x27   :  { %207 = vsyncadd [#allocation6], 4294967040  ;;  %v61_v0 = vld [vmem:[#allocation2] sm:$0xff]  ;;  %v62_v1 = vld [vmem:[#allocation2 + $0x8] sm:$0xff]  ;;  %s216_s10 = smov [#allocation7]   ;;  %s217_s12 = smov [#allocation8]  }
  0x28   :  { %v63_v2 = vld [vmem:[#allocation5] sm:$0xff]  ;;  %v64_v3 = vld [vmem:[#allocation5 + $0x8] sm:$0xff]  ;;  %s85_s11 = sshll.u32 %s216_s10, 4  ;;  %s95_s1 = sshll.u32 %s217_s12, 4  ;;  %s86_s11 = int_to_ptr.vmem [resolvable:$true] %s85_s11  ;;  %s96_s1 = int_to_ptr.vmem [resolvable:$true] %s95_s1 }
  0x29   :  { %v65_v4 = vsub.f32 %v61_v0, %v63_v2  ;;  %v66_v5 = vsub.f32 %v62_v1, %v64_v3  ;;  %s160_s13 = scalar_lea.vmem %s86_s11, 128  ;;  %p165_p3 = scmp.lt.s32.totalorder %s86_s11, %s86_s11 }
  0x2a   :  { %p161_p2 = scmp.ne.s32.totalorder %s86_s11, %s160_s13  ;;  %p166_p4 = scmp.lt.s32.totalorder %s160_s13, %s160_s13 }
  0x2b   :  { %v68_v6 = vmul.f32 %v65_v4, %v65_v4  ;;  %v74_v7 = vand.u32 2147483647, %v65_v4  ;;  %v69_v8 = vmul.f32 %v66_v5, %v66_v5  ;;  %v75_v9 = vand.u32 2147483647, %v66_v5 }
  0x2c   :  { %p167_p5 = por %p166_p4, %p165_p3 }
  0x2d   :  { %v70_v10 = vadd.f32 %v69_v8, %v68_v6  ;;  %v76_v11 = vadd.f32 %v75_v9, %v74_v7 }
  0x2e   :  { %p168_p6 = pnand %p167_p5, %p161_p2 }
  0x2f   :  { %72 = vst [vmem:[#allocation7] sm:$0xff] %v70_v10  ;;  %78 = vst [vmem:[#allocation8] sm:$0xff] %v76_v11 }
  0x30   :  { %171 = shalt.err (!%p168_p6)
}
  0x31   :  { %s172_s16 = scalar_lea.hbm %s288_s2, 128 }
  0x32   :  { %p173_p7 = scmp.ne.s32.totalorder %s288_s2, %s172_s16  ;;  %p176_p8 = scmp.lt.u32.totalorder %s172_s16, %s288_s2 }
  0x34   :  { %p178_p9 = pnand %p176_p8, %p173_p7 }
  0x36   :  { %181 = shalt.err (!%p178_p9)
}
  0x37   :  { %88 = dma.vmem_to_hbm [thread:$0]  %s86_s11, 128, %s288_s2, [#allocation4]  }
  0x38   :  { %s182_s23 = scalar_lea.vmem %s96_s1, 128  ;;  %p187_p11 = scmp.lt.s32.totalorder %s96_s1, %s96_s1 }
  0x39   :  { %p183_p10 = scmp.ne.s32.totalorder %s96_s1, %s182_s23  ;;  %p188_p12 = scmp.lt.s32.totalorder %s182_s23, %s182_s23 }
  0x3b   :  { %p189_p13 = por %p188_p12, %p187_p11 }
  0x3d   :  { %p190_p0 = pnand %p189_p13, %p183_p10 }
  0x3f   :  { %193 = shalt.err (!%p190_p0)
}
  0x40   :  { %s194_s26 = scalar_lea.hbm %s289_s3, 128 }
  0x41   :  { %p195_p1 = scmp.ne.s32.totalorder %s289_s3, %s194_s26  ;;  %p198_p2 = scmp.lt.u32.totalorder %s194_s26, %s289_s3 }
  0x43   :  { %p200_p3 = pnand %p198_p2, %p195_p1 }
  0x45   :  { %203 = shalt.err (!%p200_p3)
}
  0x46   :  { %98 = dma.vmem_to_hbm [thread:$0]  %s96_s1, 128, %s289_s3, [#allocation9]  }
  0x47   :  { %208 = dma.done.wait [#allocation4], 128  }
  0x48   :  { %209 = vsyncadd [#allocation4], 4294967168 }
  0x49   :  { %210 = dma.done.wait [#allocation9], 128  }
  0x4a   :  { %211 = vsyncadd [#allocation9], 4294967168 }
  0x4b   :  { %105 = vsyncpa [#allocation3], 1 }
  0x4c   :  { %106 = vsyncpa [#allocation6], 1 }
  0x4d   :  { %107 = vsyncpa [#allocation4], 1 }
  0x4e   :  { %108 = vsyncpa [#allocation9], 1 }

</bundles_post_ra>
